<compile_context>
chip_gen: v7x
topology: tpu7x:2x2x1
jax: 0.10.0
libtpu: 0.0.40
codegen_flags: <defaults>
</compile_context>

<pallas_src>
import jax
import jax.numpy as jnp
from jax.experimental import pallas as pl
from jax.experimental.pallas import tpu as pltpu


def _round_up(x, m):
    return (x + m - 1) // m * m


def _cdiv(a, b):
    return (a + b - 1) // b


def _erf_poly(x):
    # Abramowitz & Stegun 7.1.26, max abs error ~1.5e-7.
    # Divide implemented as EUP approx-reciprocal + one Newton refinement
    # (≈ f32 accuracy, but the heavy lifting leaves the VALU slot).
    a1, a2, a3, a4, a5 = (0.254829592, -0.284496736, 1.421413741,
                          -1.453152027, 1.061405429)
    p = 0.3275911
    s = jnp.where(x < 0.0, -1.0, 1.0)
    z = jnp.abs(x)
    den = 1.0 + p * z
    r = pl.reciprocal(den, approx=True)
    t = r * (2.0 - den * r)          # Newton step -> full f32 precision
    poly = ((((a5 * t + a4) * t + a3) * t + a2) * t + a1) * t
    return s * (1.0 - poly * jnp.exp(-z * z))


def _gelu_exact(x):
    # Matches PyTorch nn.GELU() (erf-based) to ~1e-7.
    return 0.5 * x * (1.0 + _erf_poly(x * 0.7071067811865476))


def _make_fused_kernel(L, use_bf16):
    """Fused kernel over all L up-sampling stages for one row tile.

    refs layout:
      refs[0]                       : low tile (coarsest scale), (TILE_R, T0_pad)
      refs[1+5i : 6+5i], i in [0,L) : high_i, w1t_i, b1_i, w2t_i, b2_i
      refs[1+5L + i],    i in [0,L) : out_i, (TILE_R, T_{i+1}_pad)
    """
    def kernel(*refs):
        out_refs = refs[1 + 5 * L:]
        cur = refs[0][...]                       # carried activation, f32
        for i in range(L):
            high_ref, w1_ref, b1_ref, w2_ref, b2_ref = refs[1 + 5 * i: 6 + 5 * i]
            lhs = cur.astype(jnp.bfloat16) if use_bf16 else cur
            y = jnp.dot(lhs, w1_ref[...], preferred_element_type=jnp.float32)
            y = y + b1_ref[...]
            y = _gelu_exact(y)
            lhs2 = y.astype(jnp.bfloat16) if use_bf16 else y
            y = jnp.dot(lhs2, w2_ref[...], preferred_element_type=jnp.float32)
            y = y + b2_ref[...]
            cur = high_ref[...] + y              # residual; stays in VMEM/vregs
            out_refs[i][...] = cur.astype(out_refs[i].dtype)
    return kernel


def multi_scale_trend_mixing(trend_list, params, tile_r=1024, use_bf16=False):
    """JAX/Pallas equivalent of MultiScaleTrendMixing.forward.

    trend_list: list of (B, C, T_i) arrays, finest -> coarsest.
    params:     list of (w1, b1, w2, b2) tuples in PyTorch Linear layout
                (w1: (T_out, T_in), w2: (T_out, T_out)), same order as
                self.up_sampling_layers.
    Returns the same list the PyTorch module returns: (B, T_i, C) tensors,
    finest -> coarsest.
    """
    rev = [jnp.asarray(x, jnp.float32) for x in trend_list[::-1]]   # coarsest first
    B, C, _ = rev[0].shape
    R = B * C
    L = len(rev) - 1
    assert L >= 1, "need at least two scales (as the PyTorch forward requires)"
    Ts = [x.shape[-1] for x in rev]               # coarsest -> finest
    Tp = [_round_up(t, 128) for t in Ts]

    # Row tiling: pad R only to a multiple of 8; make the parallel grid have
    # >= 2 steps whenever possible so both v7x TensorCores are used.
    R8 = _round_up(R, 8)
    n_tiles = max(1, _cdiv(R8, tile_r))
    if n_tiles < 2 and R8 >= 16:
        n_tiles = 2
    tile = _round_up(_cdiv(R8, n_tiles), 8)
    R_pad = n_tiles * tile

    def rows_padded(x, t_pad):
        xr = x.reshape(R, x.shape[-1])
        return jnp.pad(xr, ((0, R_pad - R), (0, t_pad - x.shape[-1])))

    wdtype = jnp.bfloat16 if use_bf16 else jnp.float32
    w_isize = 2 if use_bf16 else 4

    inputs = [rows_padded(rev[0], Tp[0])]
    in_specs = [pl.BlockSpec((tile, Tp[0]), lambda r: (r, 0))]
    for i in range(L):
        t_in, t_out = Ts[i], Ts[i + 1]
        tp_in, tp_out = Tp[i], Tp[i + 1]
        w1, b1, w2, b2 = params[i]
        w1t = jnp.pad(jnp.asarray(w1, jnp.float32).T,
                      ((0, tp_in - t_in), (0, tp_out - t_out))).astype(wdtype)
        b1p = jnp.pad(jnp.asarray(b1, jnp.float32).reshape(1, -1),
                      ((0, 0), (0, tp_out - t_out)))
        w2t = jnp.pad(jnp.asarray(w2, jnp.float32).T,
                      ((0, tp_out - t_out), (0, tp_out - t_out))).astype(wdtype)
        b2p = jnp.pad(jnp.asarray(b2, jnp.float32).reshape(1, -1),
                      ((0, 0), (0, tp_out - t_out)))
        inputs += [rows_padded(rev[i + 1], tp_out), w1t, b1p, w2t, b2p]
        in_specs += [
            pl.BlockSpec((tile, tp_out), lambda r: (r, 0)),
            pl.BlockSpec((tp_in, tp_out), lambda r: (0, 0)),
            pl.BlockSpec((1, tp_out), lambda r: (0, 0)),
            pl.BlockSpec((tp_out, tp_out), lambda r: (0, 0)),
            pl.BlockSpec((1, tp_out), lambda r: (0, 0)),
        ]

    out_shape = tuple(jax.ShapeDtypeStruct((R_pad, Tp[i + 1]), jnp.float32)
                      for i in range(L))
    out_specs = tuple(pl.BlockSpec((tile, Tp[i + 1]), lambda r: (r, 0))
                      for i in range(L))

    # Advisory cost estimate for the XLA scheduler.
    mm_elems = sum(Tp[i] * Tp[i + 1] + Tp[i + 1] * Tp[i + 1] for i in range(L))
    out_lanes = sum(Tp[i + 1] for i in range(L))
    flops = int(2 * R_pad * mm_elems)
    transcendentals = int(2 * R_pad * out_lanes)          # exp + rcp per element
    bytes_accessed = int(4 * R_pad * (Tp[0] + 2 * out_lanes)
                         + w_isize * mm_elems + 4 * 2 * out_lanes)

    # Explicit VMEM budget (double-buffered tiles + resident weights) + headroom,
    # capped at 64 MiB so the limit is always <= physical VMEM (v7x included).
    per_step = (2 * 4 * tile * (Tp[0] + 2 * out_lanes)
                + 2 * w_isize * mm_elems
                + 2 * 4 * 2 * out_lanes)
    vmem_limit = int(min(64 * 1024 * 1024,
                         max(32 * 1024 * 1024, per_step * 3 // 2 + (2 << 20))))

    outs_p = pl.pallas_call(
        _make_fused_kernel(L, use_bf16),
        out_shape=out_shape,
        grid=(n_tiles,),
        in_specs=in_specs,
        out_specs=out_specs,
        compiler_params=pltpu.CompilerParams(
            dimension_semantics=("parallel",),
            vmem_limit_bytes=vmem_limit),
        cost_estimate=pl.CostEstimate(
            flops=flops, transcendentals=transcendentals,
            bytes_accessed=bytes_accessed),
    )(*inputs)

    # Assemble the user-visible list: slice padding off, restore (B, T, C).
    out_list = [jnp.transpose(rev[0], (0, 2, 1))]
    for i in range(L):
        t_out = Ts[i + 1]
        o = outs_p[i][:R, :t_out].reshape(B, C, t_out)
        out_list.append(jnp.transpose(o, (0, 2, 1)))
    out_list.reverse()
    return out_list


def _reference(trend_list, params):
    """Pure-JAX mirror of the PyTorch forward (for sanity checking)."""
    rev = [jnp.asarray(x, jnp.float32) for x in trend_list[::-1]]
    out_low, out_high = rev[0], rev[1]
    outs = [jnp.transpose(out_low, (0, 2, 1))]
    for i in range(len(rev) - 1):
        w1, b1, w2, b2 = params[i]
        y = out_low @ w1.T + b1
        y = 0.5 * y * (1.0 + jax.scipy.special.erf(y / jnp.sqrt(2.0)))  # exact GELU
        y = y @ w2.T + b2
        out_high = out_high + y
        out_low = out_high
        if i + 2 <= len(rev) - 1:
            out_high = rev[i + 2]
        outs.append(jnp.transpose(out_low, (0, 2, 1)))
    outs.reverse()
    return outs


if __name__ == "__main__":
    key = jax.random.PRNGKey(0)

    # configs: seq_len=32, down_sampling_window=2, down_sampling_layers=2
    seq_len, dsw, L = 32, 2, 2
    B, C = 2, 8
    Ts = [seq_len // dsw ** i for i in range(L + 1)]   # [32, 16, 8], finest->coarsest

    keys = iter(jax.random.split(key, 16))

    trend_list = [jax.random.normal(next(keys), (B, C, t), dtype=jnp.float32)
                  for t in Ts]

    # up_sampling_layers[j]: Linear(T_{L-j} -> T_{L-j-1}), GELU,
    #                        Linear(T_{L-j-1} -> T_{L-j-1})
    params = []
    for j in range(L):
        t_in = Ts[L - j]
        t_out = Ts[L - j - 1]
        s1 = 1.0 / (t_in ** 0.5)
        w1 = jax.random.uniform(next(keys), (t_out, t_in), jnp.float32, -s1, s1)
        b1 = jax.random.uniform(next(keys), (t_out,), jnp.float32, -s1, s1)
        s2 = 1.0 / (t_out ** 0.5)
        w2 = jax.random.uniform(next(keys), (t_out, t_out), jnp.float32, -s2, s2)
        b2 = jax.random.uniform(next(keys), (t_out,), jnp.float32, -s2, s2)
        params.append((w1, b1, w2, b2))

    refs = _reference(trend_list, params)

    # Default (f32-exact) fused kernel.
    outs = multi_scale_trend_mixing(trend_list, params)
    outs = jax.block_until_ready(outs)
    assert len(outs) == len(refs)
    for o, r in zip(outs, refs):
        assert o.shape == r.shape, (o.shape, r.shape)
        assert float(jnp.max(jnp.abs(o - r))) < 1e-3

    # bf16-MXU fast path (relaxed tolerance: bf16 operand rounding).
    outs_bf16 = jax.block_until_ready(
        multi_scale_trend_mixing(trend_list, params, use_bf16=True))
    for o, r in zip(outs_bf16, refs):
        assert o.shape == r.shape, (o.shape, r.shape)
        assert float(jnp.max(jnp.abs(o - r))) < 1e-1

    print("KERNEL_OK")
</pallas_src>

<mosaic_0001>
module attributes {stable_mosaic.version = 11 : i64} {
  func.func @kernel(%arg0: i32, %arg1: memref<8x128xf32, #tpu.memory_space<vmem>>, %arg2: memref<8x128xf32, #tpu.memory_space<vmem>>, %arg3: memref<128x128xf32, #tpu.memory_space<vmem>>, %arg4: memref<1x128xf32, #tpu.memory_space<vmem>>, %arg5: memref<128x128xf32, #tpu.memory_space<vmem>>, %arg6: memref<1x128xf32, #tpu.memory_space<vmem>>, %arg7: memref<8x128xf32, #tpu.memory_space<vmem>>, %arg8: memref<128x128xf32, #tpu.memory_space<vmem>>, %arg9: memref<1x128xf32, #tpu.memory_space<vmem>>, %arg10: memref<128x128xf32, #tpu.memory_space<vmem>>, %arg11: memref<1x128xf32, #tpu.memory_space<vmem>>, %arg12: memref<8x128xf32, #tpu.memory_space<vmem>>, %arg13: memref<8x128xf32, #tpu.memory_space<vmem>>) attributes {dimension_semantics = [#tpu.dimension_semantics<parallel>], iteration_bounds = array<i64: 2>, scalar_prefetch = 0 : i64, scratch_operands = 0 : i64, tpu.core_type = #tpu.core_type<tc>, window_params = [{transform_indices = @transform_0, window_bounds = array<i64: 8, 128>}, {transform_indices = @transform_1, window_bounds = array<i64: 8, 128>}, {pipeline_mode = #tpu.pipeline_mode<synchronous>, transform_indices = @transform_2, window_bounds = array<i64: 128, 128>}, {pipeline_mode = #tpu.pipeline_mode<synchronous>, transform_indices = @transform_3, window_bounds = array<i64: 1, 128>}, {pipeline_mode = #tpu.pipeline_mode<synchronous>, transform_indices = @transform_4, window_bounds = array<i64: 128, 128>}, {pipeline_mode = #tpu.pipeline_mode<synchronous>, transform_indices = @transform_5, window_bounds = array<i64: 1, 128>}, {transform_indices = @transform_6, window_bounds = array<i64: 8, 128>}, {pipeline_mode = #tpu.pipeline_mode<synchronous>, transform_indices = @transform_7, window_bounds = array<i64: 128, 128>}, {pipeline_mode = #tpu.pipeline_mode<synchronous>, transform_indices = @transform_8, window_bounds = array<i64: 1, 128>}, {pipeline_mode = #tpu.pipeline_mode<synchronous>, transform_indices = @transform_9, window_bounds = array<i64: 128, 128>}, {pipeline_mode = #tpu.pipeline_mode<synchronous>, transform_indices = @transform_10, window_bounds = array<i64: 1, 128>}, {transform_indices = @transform_11, window_bounds = array<i64: 8, 128>}, {transform_indices = @transform_12, window_bounds = array<i64: 8, 128>}]} {
    %c0 = arith.constant 0 : index
    %c0_0 = arith.constant 0 : index
    %0 = vector.load %arg1[%c0, %c0_0] : memref<8x128xf32, #tpu.memory_space<vmem>>, vector<8x128xf32>
    %c0_1 = arith.constant 0 : index
    %c0_2 = arith.constant 0 : index
    %1 = vector.load %arg3[%c0_1, %c0_2] : memref<128x128xf32, #tpu.memory_space<vmem>>, vector<128x128xf32>
    %cst = arith.constant dense<0.000000e+00> : vector<8x128xf32>
    %2 = tpu.matmul %0, %1, %cst {dimension_numbers = #tpu.dot_dimension_numbers<[1], [0], [0], [1], [0, 0, 1, 1], [], []>} : vector<8x128xf32>, vector<128x128xf32>, vector<8x128xf32> -> vector<8x128xf32>
    %c0_3 = arith.constant 0 : index
    %c0_4 = arith.constant 0 : index
    %3 = vector.load %arg4[%c0_3, %c0_4] : memref<1x128xf32, #tpu.memory_space<vmem>>, vector<1x128xf32>
    %4 = vector.broadcast %3 : vector<1x128xf32> to vector<8x128xf32>
    %5 = arith.addf %2, %4 : vector<8x128xf32>
    %cst_5 = arith.constant 5.000000e-01 : f32
    %6 = vector.broadcast %cst_5 : f32 to vector<8x128xf32>
    %7 = arith.mulf %6, %5 : vector<8x128xf32>
    %cst_6 = arith.constant 0.707106769 : f32
    %8 = vector.broadcast %cst_6 : f32 to vector<8x128xf32>
    %9 = arith.mulf %5, %8 : vector<8x128xf32>
    %cst_7 = arith.constant 0.000000e+00 : f32
    %10 = vector.broadcast %cst_7 : f32 to vector<8x128xf32>
    %11 = arith.cmpf olt, %9, %10 : vector<8x128xf32>
    %cst_8 = arith.constant -1.000000e+00 : f32
    %cst_9 = arith.constant 1.000000e+00 : f32
    %12 = vector.broadcast %cst_8 : f32 to vector<8x128xf32>
    %13 = vector.broadcast %cst_9 : f32 to vector<8x128xf32>
    %14 = arith.select %11, %12, %13 : vector<8x128xi1>, vector<8x128xf32>
    %15 = math.absf %9 : vector<8x128xf32>
    %cst_10 = arith.constant 0.327591091 : f32
    %16 = vector.broadcast %cst_10 : f32 to vector<8x128xf32>
    %17 = arith.mulf %16, %15 : vector<8x128xf32>
    %cst_11 = arith.constant 1.000000e+00 : f32
    %18 = vector.broadcast %cst_11 : f32 to vector<8x128xf32>
    %19 = arith.addf %18, %17 : vector<8x128xf32>
    %20 = tpu.reciprocal %19 {approx = true} : vector<8x128xf32> -> vector<8x128xf32>
    %21 = arith.mulf %19, %20 : vector<8x128xf32>
    %cst_12 = arith.constant 2.000000e+00 : f32
    %22 = vector.broadcast %cst_12 : f32 to vector<8x128xf32>
    %23 = arith.subf %22, %21 : vector<8x128xf32>
    %24 = arith.mulf %20, %23 : vector<8x128xf32>
    %cst_13 = arith.constant 1.06140542 : f32
    %25 = vector.broadcast %cst_13 : f32 to vector<8x128xf32>
    %26 = arith.mulf %25, %24 : vector<8x128xf32>
    %cst_14 = arith.constant -1.45315206 : f32
    %27 = vector.broadcast %cst_14 : f32 to vector<8x128xf32>
    %28 = arith.addf %26, %27 : vector<8x128xf32>
    %29 = arith.mulf %28, %24 : vector<8x128xf32>
    %cst_15 = arith.constant 1.42141378 : f32
    %30 = vector.broadcast %cst_15 : f32 to vector<8x128xf32>
    %31 = arith.addf %29, %30 : vector<8x128xf32>
    %32 = arith.mulf %31, %24 : vector<8x128xf32>
    %cst_16 = arith.constant -0.284496725 : f32
    %33 = vector.broadcast %cst_16 : f32 to vector<8x128xf32>
    %34 = arith.addf %32, %33 : vector<8x128xf32>
    %35 = arith.mulf %34, %24 : vector<8x128xf32>
    %cst_17 = arith.constant 0.254829586 : f32
    %36 = vector.broadcast %cst_17 : f32 to vector<8x128xf32>
    %37 = arith.addf %35, %36 : vector<8x128xf32>
    %38 = arith.mulf %37, %24 : vector<8x128xf32>
    %cst_18 = arith.constant 0.000000e+00 : f32
    %39 = vector.broadcast %cst_18 : f32 to vector<8x128xf32>
    %40 = arith.subf %39, %15 : vector<8x128xf32>
    %41 = arith.mulf %40, %15 : vector<8x128xf32>
    %42 = math.exp %41 : vector<8x128xf32>
    %43 = arith.mulf %38, %42 : vector<8x128xf32>
    %cst_19 = arith.constant 1.000000e+00 : f32
    %44 = vector.broadcast %cst_19 : f32 to vector<8x128xf32>
    %45 = arith.subf %44, %43 : vector<8x128xf32>
    %46 = arith.mulf %14, %45 : vector<8x128xf32>
    %cst_20 = arith.constant 1.000000e+00 : f32
    %47 = vector.broadcast %cst_20 : f32 to vector<8x128xf32>
    %48 = arith.addf %47, %46 : vector<8x128xf32>
    %49 = arith.mulf %7, %48 : vector<8x128xf32>
    %c0_21 = arith.constant 0 : index
    %c0_22 = arith.constant 0 : index
    %50 = vector.load %arg5[%c0_21, %c0_22] : memref<128x128xf32, #tpu.memory_space<vmem>>, vector<128x128xf32>
    %cst_23 = arith.constant dense<0.000000e+00> : vector<8x128xf32>
    %51 = tpu.matmul %49, %50, %cst_23 {dimension_numbers = #tpu.dot_dimension_numbers<[1], [0], [0], [1], [0, 0, 1, 1], [], []>} : vector<8x128xf32>, vector<128x128xf32>, vector<8x128xf32> -> vector<8x128xf32>
    %c0_24 = arith.constant 0 : index
    %c0_25 = arith.constant 0 : index
    %52 = vector.load %arg6[%c0_24, %c0_25] : memref<1x128xf32, #tpu.memory_space<vmem>>, vector<1x128xf32>
    %53 = vector.broadcast %52 : vector<1x128xf32> to vector<8x128xf32>
    %54 = arith.addf %51, %53 : vector<8x128xf32>
    %c0_26 = arith.constant 0 : index
    %c0_27 = arith.constant 0 : index
    %55 = vector.load %arg2[%c0_26, %c0_27] : memref<8x128xf32, #tpu.memory_space<vmem>>, vector<8x128xf32>
    %56 = arith.addf %55, %54 : vector<8x128xf32>
    %c0_28 = arith.constant 0 : index
    %c0_29 = arith.constant 0 : index
    %57 = vector.load %arg12[%c0_28, %c0_29] : memref<8x128xf32, #tpu.memory_space<vmem>>, vector<8x128xf32>
    tpu.vector_store %arg12[%c0_28, %c0_29], %56 {strides = array<i32>} : memref<8x128xf32, #tpu.memory_space<vmem>>, vector<8x128xf32>,
    %c0_30 = arith.constant 0 : index
    %c0_31 = arith.constant 0 : index
    %58 = vector.load %arg8[%c0_30, %c0_31] : memref<128x128xf32, #tpu.memory_space<vmem>>, vector<128x128xf32>
    %cst_32 = arith.constant dense<0.000000e+00> : vector<8x128xf32>
    %59 = tpu.matmul %56, %58, %cst_32 {dimension_numbers = #tpu.dot_dimension_numbers<[1], [0], [0], [1], [0, 0, 1, 1], [], []>} : vector<8x128xf32>, vector<128x128xf32>, vector<8x128xf32> -> vector<8x128xf32>
    %c0_33 = arith.constant 0 : index
    %c0_34 = arith.constant 0 : index
    %60 = vector.load %arg9[%c0_33, %c0_34] : memref<1x128xf32, #tpu.memory_space<vmem>>, vector<1x128xf32>
    %61 = vector.broadcast %60 : vector<1x128xf32> to vector<8x128xf32>
    %62 = arith.addf %59, %61 : vector<8x128xf32>
    %cst_35 = arith.constant 5.000000e-01 : f32
    %63 = vector.broadcast %cst_35 : f32 to vector<8x128xf32>
    %64 = arith.mulf %63, %62 : vector<8x128xf32>
    %cst_36 = arith.constant 0.707106769 : f32
    %65 = vector.broadcast %cst_36 : f32 to vector<8x128xf32>
    %66 = arith.mulf %62, %65 : vector<8x128xf32>
    %cst_37 = arith.constant 0.000000e+00 : f32
    %67 = vector.broadcast %cst_37 : f32 to vector<8x128xf32>
    %68 = arith.cmpf olt, %66, %67 : vector<8x128xf32>
    %cst_38 = arith.constant -1.000000e+00 : f32
    %cst_39 = arith.constant 1.000000e+00 : f32
    %69 = vector.broadcast %cst_38 : f32 to vector<8x128xf32>
    %70 = vector.broadcast %cst_39 : f32 to vector<8x128xf32>
    %71 = arith.select %68, %69, %70 : vector<8x128xi1>, vector<8x128xf32>
    %72 = math.absf %66 : vector<8x128xf32>
    %cst_40 = arith.constant 0.327591091 : f32
    %73 = vector.broadcast %cst_40 : f32 to vector<8x128xf32>
    %74 = arith.mulf %73, %72 : vector<8x128xf32>
    %cst_41 = arith.constant 1.000000e+00 : f32
    %75 = vector.broadcast %cst_41 : f32 to vector<8x128xf32>
    %76 = arith.addf %75, %74 : vector<8x128xf32>
    %77 = tpu.reciprocal %76 {approx = true} : vector<8x128xf32> -> vector<8x128xf32>
    %78 = arith.mulf %76, %77 : vector<8x128xf32>
    %cst_42 = arith.constant 2.000000e+00 : f32
    %79 = vector.broadcast %cst_42 : f32 to vector<8x128xf32>
    %80 = arith.subf %79, %78 : vector<8x128xf32>
    %81 = arith.mulf %77, %80 : vector<8x128xf32>
    %cst_43 = arith.constant 1.06140542 : f32
    %82 = vector.broadcast %cst_43 : f32 to vector<8x128xf32>
    %83 = arith.mulf %82, %81 : vector<8x128xf32>
    %cst_44 = arith.constant -1.45315206 : f32
    %84 = vector.broadcast %cst_44 : f32 to vector<8x128xf32>
    %85 = arith.addf %83, %84 : vector<8x128xf32>
    %86 = arith.mulf %85, %81 : vector<8x128xf32>
    %cst_45 = arith.constant 1.42141378 : f32
    %87 = vector.broadcast %cst_45 : f32 to vector<8x128xf32>
    %88 = arith.addf %86, %87 : vector<8x128xf32>
    %89 = arith.mulf %88, %81 : vector<8x128xf32>
    %cst_46 = arith.constant -0.284496725 : f32
    %90 = vector.broadcast %cst_46 : f32 to vector<8x128xf32>
    %91 = arith.addf %89, %90 : vector<8x128xf32>
    %92 = arith.mulf %91, %81 : vector<8x128xf32>
    %cst_47 = arith.constant 0.254829586 : f32
    %93 = vector.broadcast %cst_47 : f32 to vector<8x128xf32>
    %94 = arith.addf %92, %93 : vector<8x128xf32>
    %95 = arith.mulf %94, %81 : vector<8x128xf32>
    %cst_48 = arith.constant 0.000000e+00 : f32
    %96 = vector.broadcast %cst_48 : f32 to vector<8x128xf32>
    %97 = arith.subf %96, %72 : vector<8x128xf32>
    %98 = arith.mulf %97, %72 : vector<8x128xf32>
    %99 = math.exp %98 : vector<8x128xf32>
    %100 = arith.mulf %95, %99 : vector<8x128xf32>
    %cst_49 = arith.constant 1.000000e+00 : f32
    %101 = vector.broadcast %cst_49 : f32 to vector<8x128xf32>
    %102 = arith.subf %101, %100 : vector<8x128xf32>
    %103 = arith.mulf %71, %102 : vector<8x128xf32>
    %cst_50 = arith.constant 1.000000e+00 : f32
    %104 = vector.broadcast %cst_50 : f32 to vector<8x128xf32>
    %105 = arith.addf %104, %103 : vector<8x128xf32>
    %106 = arith.mulf %64, %105 : vector<8x128xf32>
    %c0_51 = arith.constant 0 : index
    %c0_52 = arith.constant 0 : index
    %107 = vector.load %arg10[%c0_51, %c0_52] : memref<128x128xf32, #tpu.memory_space<vmem>>, vector<128x128xf32>
    %cst_53 = arith.constant dense<0.000000e+00> : vector<8x128xf32>
    %108 = tpu.matmul %106, %107, %cst_53 {dimension_numbers = #tpu.dot_dimension_numbers<[1], [0], [0], [1], [0, 0, 1, 1], [], []>} : vector<8x128xf32>, vector<128x128xf32>, vector<8x128xf32> -> vector<8x128xf32>
    %c0_54 = arith.constant 0 : index
    %c0_55 = arith.constant 0 : index
    %109 = vector.load %arg11[%c0_54, %c0_55] : memref<1x128xf32, #tpu.memory_space<vmem>>, vector<1x128xf32>
    %110 = vector.broadcast %109 : vector<1x128xf32> to vector<8x128xf32>
    %111 = arith.addf %108, %110 : vector<8x128xf32>
    %c0_56 = arith.constant 0 : index
    %c0_57 = arith.constant 0 : index
    %112 = vector.load %arg7[%c0_56, %c0_57] : memref<8x128xf32, #tpu.memory_space<vmem>>, vector<8x128xf32>
    %113 = arith.addf %112, %111 : vector<8x128xf32>
    %c0_58 = arith.constant 0 : index
    %c0_59 = arith.constant 0 : index
    %114 = vector.load %arg13[%c0_58, %c0_59] : memref<8x128xf32, #tpu.memory_space<vmem>>, vector<8x128xf32>
    tpu.vector_store %arg13[%c0_58, %c0_59], %113 {strides = array<i32>} : memref<8x128xf32, #tpu.memory_space<vmem>>, vector<8x128xf32>,
    return
  }
  func.func @transform_0(%arg0: i32) -> (i32, i32) {
    %c0_i32 = arith.constant 0 : i32
    %c0_i32_0 = arith.constant 0 : i32
    return %arg0, %c0_i32 : i32, i32
  }
  func.func @transform_1(%arg0: i32) -> (i32, i32) {
    %c0_i32 = arith.constant 0 : i32
    %c0_i32_0 = arith.constant 0 : i32
    return %arg0, %c0_i32 : i32, i32
  }
  func.func @transform_2(%arg0: i32) -> (i32, i32) {
    %c0_i32 = arith.constant 0 : i32
    %c0_i32_0 = arith.constant 0 : i32
    %c0_i32_1 = arith.constant 0 : i32
    return %c0_i32, %c0_i32_0 : i32, i32
  }
  func.func @transform_3(%arg0: i32) -> (i32, i32) {
    %c0_i32 = arith.constant 0 : i32
    %c0_i32_0 = arith.constant 0 : i32
    %c0_i32_1 = arith.constant 0 : i32
    return %c0_i32, %c0_i32_0 : i32, i32
  }
  func.func @transform_4(%arg0: i32) -> (i32, i32) {
    %c0_i32 = arith.constant 0 : i32
    %c0_i32_0 = arith.constant 0 : i32
    %c0_i32_1 = arith.constant 0 : i32
    return %c0_i32, %c0_i32_0 : i32, i32
  }
  func.func @transform_5(%arg0: i32) -> (i32, i32) {
    %c0_i32 = arith.constant 0 : i32
    %c0_i32_0 = arith.constant 0 : i32
    %c0_i32_1 = arith.constant 0 : i32
    return %c0_i32, %c0_i32_0 : i32, i32
  }
  func.func @transform_6(%arg0: i32) -> (i32, i32) {
    %c0_i32 = arith.constant 0 : i32
    %c0_i32_0 = arith.constant 0 : i32
    return %arg0, %c0_i32 : i32, i32
  }
  func.func @transform_7(%arg0: i32) -> (i32, i32) {
    %c0_i32 = arith.constant 0 : i32
    %c0_i32_0 = arith.constant 0 : i32
    %c0_i32_1 = arith.constant 0 : i32
    return %c0_i32, %c0_i32_0 : i32, i32
  }
  func.func @transform_8(%arg0: i32) -> (i32, i32) {
    %c0_i32 = arith.constant 0 : i32
    %c0_i32_0 = arith.constant 0 : i32
    %c0_i32_1 = arith.constant 0 : i32
    return %c0_i32, %c0_i32_0 : i32, i32
  }
  func.func @transform_9(%arg0: i32) -> (i32, i32) {
    %c0_i32 = arith.constant 0 : i32
    %c0_i32_0 = arith.constant 0 : i32
    %c0_i32_1 = arith.constant 0 : i32
    return %c0_i32, %c0_i32_0 : i32, i32
  }
  func.func @transform_10(%arg0: i32) -> (i32, i32) {
    %c0_i32 = arith.constant 0 : i32
    %c0_i32_0 = arith.constant 0 : i32
    %c0_i32_1 = arith.constant 0 : i32
    return %c0_i32, %c0_i32_0 : i32, i32
  }
  func.func @transform_11(%arg0: i32) -> (i32, i32) {
    %c0_i32 = arith.constant 0 : i32
    %c0_i32_0 = arith.constant 0 : i32
    return %arg0, %c0_i32 : i32, i32
  }
  func.func @transform_12(%arg0: i32) -> (i32, i32) {
    %c0_i32 = arith.constant 0 : i32
    %c0_i32_0 = arith.constant 0 : i32
    return %arg0, %c0_i32 : i32, i32
  }
}

</mosaic_0001>

<bundles_post_ra>
// kernel: tpu_custom_call.1
= control target key start
LH: loop header
LB: loop body
LE: loop exit
PB: predicated region body
PF: predicated region fallthrough
CT: control target
= control target key end

     0   :  { %s2441_s0 = inlined_call_operand.hbm [shape: f32[16,128], index: 0, kind: input, shape index: {}]   ;;  %s2442_s1 = inlined_call_operand.hbm [shape: f32[16,128], index: 1, kind: input, shape index: {}]   ;;  %s2443_s2 = inlined_call_operand.hbm [shape: f32[128,128], index: 2, kind: input, shape index: {}]   ;;  %s2444_s3 = inlined_call_operand.vmem [shape: f32[1,128], index: 3, kind: input, shape index: {}]   ;;  %s2445_s4 = inlined_call_operand.hbm [shape: f32[128,128], index: 4, kind: input, shape index: {}]   ;;  %s2446_s5 = inlined_call_operand.vmem [shape: f32[1,128], index: 5, kind: input, shape index: {}]   ;;  %s2447_s6 = inlined_call_operand.vmem [shape: f32[16,128], index: 6, kind: input, shape index: {}]   ;;  %s2448_s7 = inlined_call_operand.hbm [shape: f32[128,128], index: 7, kind: input, shape index: {}]   ;;  %s2449_s8 = inlined_call_operand.vmem [shape: f32[1,128], index: 8, kind: input, shape index: {}]   ;;  %s2450_s9 = inlined_call_operand.hbm [shape: f32[128,128], index: 9, kind: input, shape index: {}]   ;;  %s2451_s10 = inlined_call_operand.vmem [shape: f32[1,128], index: 10, kind: input, shape index: {}]   ;;  %s2452_s11 = inlined_call_operand.hbm [shape: f32[16,128], index: 11, kind: output, shape index: {0}]   ;;  %s2453_s12 = inlined_call_operand.hbm [shape: f32[16,128], index: 12, kind: output, shape index: {1}]  }
   0x1   :  { %2460 = sst [smem:[#allocation24_spill]] %s2443_s2 }
   0x2   :  { %2461 = sst [smem:[#allocation25_spill]] %s2445_s4 }
   0x3   :  { %2462 = sst [smem:[#allocation26_spill]] %s2447_s6 }
   0x4   :  { %2463 = sst [smem:[#allocation27_spill]] %s2448_s7 }
   0x5   :  { %2464 = sst [smem:[#allocation28_spill]] %s2450_s9 }
   0x6   :  { %2465 = sst [smem:[#allocation29_spill]] %s2451_s10 }
   0x7   :  { %2466 = sst [smem:[#allocation30_spill]] %s2452_s11 }
   0x8   :  { %2467 = sst [smem:[#allocation31_spill]] %s2453_s12 }
   0x9   :  { %18 = vsyncpa [#allocation3], 0 }
   0xa   :  { %20 = vsyncpa [#allocation3 + $0x1], 0 }
   0xb   :  { %21 = vsyncpa [#allocation6], 0 }
   0xc   :  { %23 = vsyncpa [#allocation6 + $0x1], 0 }
   0xd   :  { %24 = vsyncpa [#allocation9], 0 }
   0xe   :  { %25 = vsyncpa [#allocation12], 0 }
   0xf   :  { %26 = vsyncpa [#allocation4], 0 }
  0x10   :  { %28 = vsyncpa [#allocation4 + $0x1], 0 }
  0x11   :  { %29 = vsyncpa [#allocation15], 0 }
  0x12   :  { %31 = vsyncpa [#allocation15 + $0x1], 0  ;;  %s2009_s21 = smov 0   ;;  %s2011_s22 = smov 0  }
  0x13   :  { %s2013_s23 = smov 0   ;;  %s2015_s24 = smov 0  }
  0x14 LB: > { %s1930_s25 = smov [#allocation7]   ;;  %s2030_s27 = sadd.s32 4294967295, %s1928_s24   ;;  %s1928_s24 = sphi %s2015_s24, %s2501_s24   ;;  %s1924_s23 = sphi %s2013_s23, %s2500_s23   ;;  %s1920_s22 = sphi %s2011_s22, %s2499_s22   ;;  %s1916_s21 = sphi %s2009_s21, %s2498_s21  }
  0x15   : > { %s352_s26 = sshll.u32 %s1930_s25, 4  ;;  %p1197_p0 = scmp.ge.s32.totalorder %s1928_s24, 1  ;;  %s2035_s26 = int_to_ptr.vmem [resolvable:$true] %s352_s26 }
  0x16   : > { %p2456_p1 = scmp.eq.s32.totalorder %s2030_s27, 0  ;;  %p340_p2 = scmp.lt.s32.totalorder %s1928_s24, 3 }
  0x17   : > { %s1931_s29 = smov [#allocation8]   ;;  %s1932_s14 = smov [#allocation10]  }
  0x18   : > { %p2037_p3 = pnand %p1197_p0, %p340_p2  ;;  %s368_s30 = sshll.u32 %s1931_s29, 4  ;;  %s2050_s30 = int_to_ptr.vmem [resolvable:$true] %s368_s30 }
  0x19   : > { %s384_s15 = sshll.u32 %s1932_s14, 4  ;;  %s2470_s2 = sld [smem:[#allocation24_spill]]  ;;  %s2052_s15 = int_to_ptr.vmem [resolvable:$true] %s384_s15 }
  0x1a   : > { %s2468_s28 = scalar_select %p2037_p3, 1, 0 }
  0x1b   : > { %p1555_p5 = pneg %p2037_p3 }
  0x1d   : > { %p2046_p6 = pnand %p1555_p5, %p2456_p1 }
  0x1f   : > { %s1642_s18 = scalar_lea.hbm %s2470_s2, 2048  ;;  %p2062_p8 = pneg %p2046_p6 }
  0x20   : > { %p1643_p7 = scmp.ne.s32.totalorder %s2470_s2, %s1642_s18  ;;  %p1649_p11 = scmp.lt.u32.totalorder %s1642_s18, %s2470_s2 }
  0x22   : > { %p1645_p9 = pnand %p2062_p8, %p1643_p7 }
  0x24   : > { %p1646_p10 = pneg %p1645_p9 }
  0x26   : > { %p1651_p12 = pnand %p1649_p11, %p1646_p10 }
  0x28   : > { %1654 = shalt.err (!%p1651_p12)
}
  0x29   : > { %s1655_s16 = scalar_lea.vmem %s2035_s26, 2048  ;;  %p1663_p5 = scmp.lt.s32.totalorder %s2035_s26, %s2035_s26 }
  0x2a   : > { %p1656_p13 = scmp.ne.s32.totalorder %s2035_s26, %s1655_s16  ;;  %p1664_p4 = scmp.lt.s32.totalorder %s1655_s16, %s1655_s16 }
  0x2c   : > { %p1658_p0 = pnand %p1656_p13, %p2062_p8  ;;  %p1665_p7 = por %p1664_p4, %p1663_p5 }
  0x2e   : > { %p1659_p2 = pneg %p1658_p0 }
  0x30   : > { %p1666_p9 = pnand %p1665_p7, %p1659_p2 }
  0x32   : > { %1669 = shalt.err (!%p1666_p9)
}
  0x33   : > { %s1933_s17 = smov 128   ;;  %s1934_s18 = smov 8  }
  0x34   : > { %1558 = dma.hbm_to_vmem [thread:$0]  (!%p2046_p6), %s2470_s2, 2048, %s2035_s26, [#allocation6], %s1933_s17, %s1933_s17, %s1934_s18  }
  0x35   : > { %s2472_s4 = sld [smem:[#allocation25_spill]] }
  0x3b   : > { %s1670_s16 = scalar_lea.hbm %s2472_s4, 2048 }
  0x3c   : > { %p1671_p4 = scmp.ne.s32.totalorder %s2472_s4, %s1670_s16  ;;  %p1677_p12 = scmp.lt.u32.totalorder %s1670_s16, %s2472_s4 }
  0x3e   : > { %p1673_p10 = pnand %p1671_p4, %p2062_p8 }
  0x40   : > { %p1674_p11 = pneg %p1673_p10 }
  0x42   : > { %p1679_p13 = pnand %p1677_p12, %p1674_p11 }
  0x44   : > { %1682 = shalt.err (!%p1679_p13)
}
  0x45   : > { %s1683_s26 = scalar_lea.vmem %s2050_s30, 2048  ;;  %p1691_p7 = scmp.lt.s32.totalorder %s2050_s30, %s2050_s30 }
  0x46   : > { %p1684_p0 = scmp.ne.s32.totalorder %s2050_s30, %s1683_s26  ;;  %p1692_p9 = scmp.lt.s32.totalorder %s1683_s26, %s1683_s26 }
  0x48   : > { %p1686_p2 = pnand %p1684_p0, %p2062_p8  ;;  %p1693_p4 = por %p1692_p9, %p1691_p7 }
  0x4a   : > { %p1687_p5 = pneg %p1686_p2 }
  0x4c   : > { %p1694_p10 = pnand %p1693_p4, %p1687_p5 }
  0x4e   : > { %1697 = shalt.err (!%p1694_p10)
}
  0x4f   : > { %1561 = dma.hbm_to_vmem [thread:$0]  (!%p2046_p6), %s2472_s4, 2048, %s2050_s30, [#allocation9], %s1933_s17, %s1933_s17, %s1934_s18  }
  0x50   : > { %s2473_s7 = sld [smem:[#allocation27_spill]] }
  0x56   : > { %s1698_s19 = scalar_lea.hbm %s2473_s7, 2048 }
  0x57   : > { %p1699_p11 = scmp.ne.s32.totalorder %s2473_s7, %s1698_s19  ;;  %p1705_p0 = scmp.lt.u32.totalorder %s1698_s19, %s2473_s7 }
  0x59   : > { %p1701_p12 = pnand %p1699_p11, %p2062_p8 }
  0x5b   : > { %p1702_p13 = pneg %p1701_p12 }
  0x5d   : > { %p1707_p2 = pnand %p1705_p0, %p1702_p13 }
  0x5f   : > { %1710 = shalt.err (!%p1707_p2)
}
  0x60   : > { %s1711_s30 = scalar_lea.vmem %s2052_s15, 2048  ;;  %p1719_p4 = scmp.lt.s32.totalorder %s2052_s15, %s2052_s15 }
  0x61   : > { %p1712_p5 = scmp.ne.s32.totalorder %s2052_s15, %s1711_s30  ;;  %p1720_p10 = scmp.lt.s32.totalorder %s1711_s30, %s1711_s30 }
  0x63   : > { %p1714_p7 = pnand %p1712_p5, %p2062_p8  ;;  %p1721_p11 = por %p1720_p10, %p1719_p4 }
  0x65   : > { %p1715_p9 = pneg %p1714_p7 }
  0x67   : > { %p1722_p12 = pnand %p1721_p11, %p1715_p9 }
  0x69   : > { %1725 = shalt.err (!%p1722_p12)
}
  0x6a   : > { %1564 = dma.hbm_to_vmem [thread:$0]  (!%p2046_p6), %s2473_s7, 2048, %s2052_s15, [#allocation9], %s1933_s17, %s1933_s17, %s1934_s18  }
  0x6b   : > { %s1935_s10 = smov [#allocation11]   ;;  %s2474_s9 = sld [smem:[#allocation28_spill]] }
  0x6c   : > { %s400_s11 = sshll.u32 %s1935_s10, 4  ;;  %s401_s11 = int_to_ptr.vmem [resolvable:$true] %s400_s11 }
  0x71   : > { %s1726_s20 = scalar_lea.hbm %s2474_s9, 2048 }
  0x72   : > { %p1727_p13 = scmp.ne.s32.totalorder %s2474_s9, %s1726_s20  ;;  %p1733_p5 = scmp.lt.u32.totalorder %s1726_s20, %s2474_s9 }
  0x74   : > { %p1729_p0 = pnand %p1727_p13, %p2062_p8 }
  0x76   : > { %p1730_p2 = pneg %p1729_p0 }
  0x78   : > { %p1735_p7 = pnand %p1733_p5, %p1730_p2 }
  0x7a   : > { %1738 = shalt.err (!%p1735_p7)
}
  0x7b   : > { %s1739_s15 = scalar_lea.vmem %s401_s11, 2048  ;;  %p1747_p11 = scmp.lt.s32.totalorder %s401_s11, %s401_s11 }
  0x7c   : > { %p1740_p9 = scmp.ne.s32.totalorder %s401_s11, %s1739_s15  ;;  %p1748_p12 = scmp.lt.s32.totalorder %s1739_s15, %s1739_s15 }
  0x7e   : > { %p1742_p4 = pnand %p1740_p9, %p2062_p8  ;;  %p1749_p1 = por %p1748_p12, %p1747_p11 }
  0x80   : > { %p1743_p10 = pneg %p1742_p4 }
  0x82   : > { %p1750_p3 = pnand %p1749_p1, %p1743_p10 }
  0x84   : > { %1753 = shalt.err (!%p1750_p3)
}
  0x85   : > { %1567 = dma.hbm_to_vmem [thread:$0]  (!%p2046_p6), %s2474_s9, 2048, %s401_s11, [#allocation12], %s1933_s17, %s1933_s17, %s1934_s18  }
  0x86   : > { %s1196_s13 = sadd.s32 4294967294, %s1928_s24   ;;  %s2161_s25 = sadd.s32 1, %s1928_s24  }
  0x87   : > { %s41_s10 = ssub.s32 %s1928_s24, %s2161_s25  ;;  %s44_s12 = sadd.s32 1, %s1924_s23 }
  0x88   : > { %p42_p1 = scmp.eq.s32.totalorder %s41_s10, 0  ;;  %p51_p3 = scmp.ne.s32.totalorder %s1924_s23, %s1920_s22 }
  0x89   : > { %p52_p8 = scmp.eq.s32.totalorder %s1928_s24, 0  ;;  %p57_p13 = scmp.ne.s32.totalorder %s1920_s22, %s1916_s21 }
  0x8a   : > { %s2172_s19 = scalar_select %p42_p1, %s1924_s23, %s44_s12  }
  0x8b   : > { %p2174_p0 = por %p52_p8, %p51_p3  ;;  %p2477_p2 = scmp.eq.s32.totalorder %s2030_s27, 0 }
  0x8c   : > { %2475 = sst [smem:[#allocation23_spill]] %s2172_s19  ;;  %p301_p5 = scmp.eq.s32.totalorder %s2030_s27, 1 }
  0x8d   : > { %p2180_p6 = por %p2477_p2, %p57_p13  ;;  %p307_p7 = scmp.eq.s32.totalorder %s1196_s13, 1 }
  0x8e   : > { %p1586_p9 = scmp.lt.s32.totalorder %s1928_s24, 2  ;;  %s417_s18 = sand.u32 1, %s1924_s23  }
  0x8f   : > { %s2478_s17 = scalar_select %p2180_p6, 1, 0 }
  0x90   : > { %p2187_p4 = por %p301_p5, %p51_p3  ;;  %p2191_p10 = por %p307_p7, %p57_p13 }
  0x91   : > { %s2195_s14 = sshll.u32 %s417_s18, 3  ;;  %s1204_s16 = sshll.u32 %s1928_s24, 7 }
  0x92   : > { %s2479_s11 = scalar_select %p2187_p4, 1, 0 }
  0x93   : > { %s2480_s29 = scalar_select %p2191_p10, 1, 0 }
  0x94   : > { %s2201_s26 = scalar_lea.hbm %s2441_s0, %s1204_s16  ;;  %s421_s6 = scalar_lea.vmem [#allocation2], %s2195_s14 }
  0x95   : > { %s428_s13 = sshll.u32 %s421_s6, 4  ;;  %p2208_p11 = pnand %p1586_p9, %p2174_p0  ;;  %s2204_s13 = int_to_ptr.vmem [resolvable:$true] %s428_s13 }
  0x96   : > { %s2215_s30 = scalar_lea.hbm %s2442_s1, %s1204_s16  ;;  %s435_s15 = sand.u32 1, %s1928_s24  }
  0x97   : > { %s418_s4 = scalar_lea.sflag [#allocation3], %s417_s18  ;;  %s1754_s7 = scalar_lea.hbm %s2201_s26, 128 }
  0x98   : > { %p1755_p12 = scmp.ne.s32.totalorder %s2201_s26, %s1754_s7  ;;  %p1756_p1 = pneg %p2208_p11 }
  0x99   : > { %s1759_s9 = scalar_lea.hbm %s2441_s0, 256  ;;  %p1760_p13 = scmp.lt.u32.totalorder %s2201_s26, %s2441_s0 }
  0x9a   : > { %p1757_p3 = pnand %p1756_p1, %p1755_p12  ;;  %p1761_p0 = scmp.lt.u32.totalorder %s1759_s9, %s1754_s7 }
  0x9b   : > { %p1763_p5 = scmp.lt.u32.totalorder %s1754_s7, %s2201_s26 }
  0x9c   : > { %p1758_p8 = pneg %p1757_p3  ;;  %p1762_p2 = por %p1761_p0, %p1760_p13 }
  0x9e   : > { %p1764_p7 = por %p1763_p5, %p1762_p2 }
  0xa0   : > { %p1765_p9 = pnand %p1764_p7, %p1758_p8 }
  0xa2   : > { %1768 = shalt.err (!%p1765_p9)
}
  0xa3   : > { %s1769_s18 = scalar_lea.vmem %s2204_s13, 128  ;;  %s1936_s16 = smov [#allocation2]  }
  0xa4   : > { %p1770_p12 = scmp.ne.s32.totalorder %s2204_s13, %s1769_s18  ;;  %s1774_s12 = sshll.u32 %s1936_s16, 4  ;;  %s1775_s12 = int_to_ptr.vmem [resolvable:$false] %s1774_s12 }
  0xa5   : > { %s1776_s19 = scalar_lea.vmem %s1775_s12, 256  ;;  %p1777_p4 = scmp.lt.s32.totalorder %s2204_s13, %s1775_s12 }
  0xa6   : > { %p1772_p3 = pnand %p1770_p12, %p1756_p1  ;;  %p1778_p13 = scmp.lt.s32.totalorder %s1776_s19, %s1769_s18 }
  0xa8   : > { %p1773_p10 = pneg %p1772_p3  ;;  %p1779_p0 = por %p1778_p13, %p1777_p4 }
  0xaa   : > { %p1780_p2 = pnand %p1779_p0, %p1773_p10 }
  0xac   : > { %1783 = shalt.err (!%p1780_p2)
}
  0xad   : > { %1571 = dma.hbm_to_vmem [thread:$0]  (!%p2208_p11), %s2201_s26, 128, %s2204_s13, %s418_s4  }
  0xae   : > { %s439_s7 = scalar_lea.vmem [#allocation5], %s2195_s14  ;;  %s436_s20 = scalar_lea.sflag [#allocation6], %s435_s15 }
  0xaf   : > { %s446_s9 = sshll.u32 %s439_s7, 4  ;;  %s1784_s6 = scalar_lea.hbm %s2215_s30, 128  ;;  %s447_s9 = int_to_ptr.vmem [resolvable:$true] %s446_s9 }
  0xb0   : > { %p1785_p4 = scmp.ne.s32.totalorder %s2215_s30, %s1784_s6  ;;  %s1789_s16 = scalar_lea.hbm %s2442_s1, 256 }
  0xb1   : > { %p1790_p5 = scmp.lt.u32.totalorder %s2215_s30, %s2442_s1  ;;  %p1791_p7 = scmp.lt.u32.totalorder %s1789_s16, %s1784_s6 }
  0xb2   : > { %p1787_p10 = pnand %p1785_p4, %p1756_p1  ;;  %p1793_p12 = scmp.lt.u32.totalorder %s1784_s6, %s2215_s30 }
  0xb3   : > { %p1792_p9 = por %p1791_p7, %p1790_p5 }
  0xb4   : > { %p1788_p8 = pneg %p1787_p10 }
  0xb5   : > { %p1794_p3 = por %p1793_p12, %p1792_p9 }
  0xb7   : > { %p1795_p13 = pnand %p1794_p3, %p1788_p8 }
  0xb9   : > { %1798 = shalt.err (!%p1795_p13)
}
  0xba   : > { %s1799_s4 = scalar_lea.vmem %s447_s9, 128  ;;  %s1937_s14 = smov [#allocation5]  }
  0xbb   : > { %p1800_p0 = scmp.ne.s32.totalorder %s447_s9, %s1799_s4  ;;  %s1804_s26 = sshll.u32 %s1937_s14, 4  ;;  %s1805_s26 = int_to_ptr.vmem [resolvable:$false] %s1804_s26 }
  0xbc   : > { %s1806_s13 = scalar_lea.vmem %s1805_s26, 256  ;;  %p1807_p10 = scmp.lt.s32.totalorder %s447_s9, %s1805_s26 }
  0xbd   : > { %p1802_p2 = pnand %p1800_p0, %p1756_p1  ;;  %p1808_p6 = scmp.lt.s32.totalorder %s1806_s13, %s1799_s4 }
  0xbf   : > { %p1803_p4 = pneg %p1802_p2  ;;  %p1809_p5 = por %p1808_p6, %p1807_p10 }
  0xc1   : > { %p1810_p7 = pnand %p1809_p5, %p1803_p4 }
  0xc3   : > { %1813 = shalt.err (!%p1810_p7)
}
  0xc4   : > { %1574 = dma.hbm_to_vmem [thread:$0]  (!%p2208_p11), %s2215_s30, 128, %s447_s9, %s436_s20  }
  0xc5   : > { %p2482_p8 = scmp.ne.s32.totalorder %s2468_s28, 0 }
  0xc6   : > { %s2268_s15 = sand.u32 (!%p2482_p8), 1, %s1920_s22   ;;  %p2483_p6 = scmp.ne.s32.totalorder (!%p2482_p8), %s2478_s17, 0 }
  0xc7   : > { %462 = sbr.rel (%p2482_p8) target bundleno = 1235 (0x4d3), region = 64  ;;  %s2271_s7 = sshll.u32 (!%p2482_p8), %s2268_s15, 3 }
  0xc8   : > { %s465_s6 = scalar_lea.sflag (!%p2482_p8), [#allocation3], %s2268_s15  ;;  %s468_s2 = scalar_lea.vmem (!%p2482_p8), [#allocation2], %s2271_s7 }
  0xce   : > { %1887 = dma.done.wait (%p2483_p6), %s465_s6, 128  }
  0xcf   : > { %1889 = vsyncadd (%p2483_p6), %s465_s6, 4294967168  ;;  %s473_s28 = sand.u32 1, %s2030_s27   ;;  %s477_s30 = scalar_lea.vmem [#allocation5], %s2271_s7 }
  0xd0   : > { %s474_s10 = scalar_lea.sflag [#allocation6], %s473_s28 }
  0xd1   : > { %1891 = dma.done.wait (%p2483_p6), %s474_s10, 128  }
  0xd2   : > { %1893 = vsyncadd (%p2483_p6), %s474_s10, 4294967168  ;;  %p2484_p11 = scmp.eq.s32.totalorder %s2030_s27, 0 }
  0xd4   : > { %1895 = dma.done.wait (%p2484_p11), [#allocation6], 2048   ;;  %p2485_p1 = pmov %p2484_p11 }
  0xd6   : > { %1897 = vsyncadd (%p2485_p1), [#allocation6], 4294965248  ;;  %p2486_p9 = pmov %p2485_p1 }
  0xd7   : > { %p2487_p12 = pmov %p2485_p1 }
  0xd8   : > { %1899 = dma.done.wait (%p2486_p9), [#allocation9], 4096  }
  0xd9   : > { %1901 = vsyncadd (%p2487_p12), [#allocation9], 4294963200  ;;  %p2488_p3 = pmov %p2485_p1 }
  0xda   : > { %p2489_p13 = pmov %p2485_p1 }
  0xdb   : > { %1903 = dma.done.wait (%p2488_p3), [#allocation12], 2048  }
  0xdc   : > { %1905 = vsyncadd (%p2489_p13), [#allocation12], 4294965248  ;;  %v1938_v0 = vmov 0.0|0.0   ;;  %vm1939_vm0 = vmmov 0   ;;  %v1940_v1 = vmov 0.0   ;;  %v553_v2 = vld [vmem:[#allocation7] sm:$0xff] }
  0xdd   : > { %1435 = vmatprep.subr.bf16.mxu0 %v1938_v0  ;;  %1327 = vmatprep.mubr.msk.f32.mxu0 %vm1939_vm0, %v1940_v1  ;;  %v554_v3 = vld [vmem:[#allocation7 + $0x8] sm:$0xff]  ;;  %v555_v4 = vld [vmem:[#allocation7 + $0x10] sm:$0xff]  ;;  %v556_v6 = vld [vmem:[#allocation7 + $0x18] sm:$0xff]  ;;  %s540_s16 = scalar_lea.vmem [#allocation13], %s2271_s7  ;;  %s1223_s4 = sshll.u32 %s2030_s27, 7 }
  0xde   : > { %1459 = vmatprep.subr.bf16.mxu1 %v1938_v0  ;;  %1362 = vmatprep.mubr.msk.f32.mxu1 %vm1939_vm0, %v1940_v1  ;;  %v1436_v5 = vpack.c.bf16 %v554_v3, %v553_v2  ;;  %v1439_v7 = vpack.c.bf16 %v556_v6, %v555_v4  ;;  %v557_v8 = vld [vmem:[#allocation7 + $0x20] sm:$0xff]  ;;  %v558_v9 = vld [vmem:[#allocation7 + $0x28] sm:$0xff]  ;;  %v559_v11 = vld [vmem:[#allocation7 + $0x30] sm:$0xff]  ;;  %s2490_s13 = sld [smem:[#allocation30_spill]]  ;;  %s990_s28 = scalar_lea.sflag [#allocation4], %s2268_s15 }
  0xdf   : > { %v1442_v10 = vpack.c.bf16 %v558_v9, %v557_v8  ;;  %v560_v12 = vld [vmem:[#allocation7 + $0x38] sm:$0xff]  ;;  %v561_v14 = vld [vmem:[#allocation7 + $0x40] sm:$0xff]  ;;  %v562_v15 = vld [vmem:[#allocation7 + $0x48] sm:$0xff]  ;;  %p2491_p2 = scmp.ne.s32.totalorder %s2479_s11, 0 }
  0xe0   : > { %1437 = vmatpush3.bf16.msra.mxu0 %v1436_v5  ;;  %v1445_v13 = vpack.c.bf16 %v560_v12, %v559_v11  ;;  %v1448_v16 = vpack.c.bf16 %v562_v15, %v561_v14  ;;  %v563_v17 = vld [vmem:[#allocation7 + $0x50] sm:$0xff]  ;;  %v564_v18 = vld [vmem:[#allocation7 + $0x58] sm:$0xff]  ;;  %v565_v20 = vld [vmem:[#allocation7 + $0x60] sm:$0xff] }
  0xe1   : > { %1438 = vmatprep.subr.bf16.mxu0 %v1938_v0  ;;  %v1451_v19 = vpack.c.bf16 %v564_v18, %v563_v17  ;;  %v566_v21 = vld [vmem:[#allocation7 + $0x68] sm:$0xff]  ;;  %v567_v23 = vld [vmem:[#allocation7 + $0x70] sm:$0xff]  ;;  %v568_v24 = vld [vmem:[#allocation7 + $0x78] sm:$0xff] }
  0xe2   : > { %v1454_v22 = vpack.c.bf16 %v566_v21, %v565_v20  ;;  %v1457_v25 = vpack.c.bf16 %v568_v24, %v567_v23  ;;  %v552_v26 = vld [vmem:[%s468_s2] sm:$0xff]  ;;  %v677_v30 = vld [vmem:[#allocation8 + $0x10] sm:$0xff]  ;;  %v678_v31 = vld [vmem:[#allocation8 + $0x18] sm:$0xff]  ;;  %s1008_s2 = sshll.u32 %s540_s16, 4  ;;  %s1009_s2 = int_to_ptr.vmem [resolvable:$true] %s1008_s2 }
  0xe3   : > { %v675_v27 = vld [vmem:[#allocation8] sm:$0xff]  ;;  %v676_v28 = vld [vmem:[#allocation8 + $0x8] sm:$0xff]  ;;  %v1463_v33 = vpack.c.bf16 %v678_v31, %v677_v30  ;;  %v681_v36 = vld [vmem:[#allocation8 + $0x30] sm:$0xff]  ;;  %s1814_s10 = scalar_lea.vmem %s1009_s2, 128 }
  0xe4   : > { %1440 = vmatpush3.bf16.msra.mxu0 %v1439_v7  ;;  %v1460_v29 = vpack.c.bf16 %v676_v28, %v675_v27  ;;  %v679_v32 = vld [vmem:[#allocation8 + $0x20] sm:$0xff]  ;;  %v680_v34 = vld [vmem:[#allocation8 + $0x28] sm:$0xff]  ;;  %v682_v37 = vld [vmem:[#allocation8 + $0x38] sm:$0xff]  ;;  %s2361_s6 = scalar_lea.hbm %s2490_s13, %s1223_s4  ;;  %p1815_p0 = scmp.ne.s32.totalorder %s1009_s2, %s1814_s10 }
  0xe5   : > { %1441 = vmatprep.subr.bf16.mxu0 %v1938_v0  ;;  %v1466_v35 = vpack.c.bf16 %v680_v34, %v679_v32  ;;  %v1469_v38 = vpack.c.bf16 %v682_v37, %v681_v36  ;;  %v683_v39 = vld [vmem:[#allocation8 + $0x40] sm:$0xff]  ;;  %v684_v40 = vld [vmem:[#allocation8 + $0x48] sm:$0xff]  ;;  %v685_v42 = vld [vmem:[#allocation8 + $0x50] sm:$0xff]  ;;  %v1941_v37 = vmov 1.0  }
  0xe6   : > { %1461 = vmatpush3.bf16.msra.mxu1 %v1460_v29  ;;  %v1472_v41 = vpack.c.bf16 %v684_v40, %v683_v39  ;;  %v686_v43 = vld [vmem:[#allocation8 + $0x58] sm:$0xff]  ;;  %v687_v45 = vld [vmem:[#allocation8 + $0x60] sm:$0xff]  ;;  %v688_v46 = vld [vmem:[#allocation8 + $0x68] sm:$0xff]  ;;  %p1816_p4 = pnand %p1815_p0, %p2491_p2 }
  0xe7   : > { %1462 = vmatprep.subr.bf16.mxu1 %v1938_v0  ;;  %v1475_v44 = vpack.c.bf16 %v686_v43, %v685_v42  ;;  %v1478_v47 = vpack.c.bf16 %v688_v46, %v687_v45  ;;  %v689_v48 = vld [vmem:[#allocation8 + $0x70] sm:$0xff]  ;;  %v690_v49 = vld [vmem:[#allocation8 + $0x78] sm:$0xff]  ;;  %v771_v51 = vld [vmem:[#allocation10] sm:$0xff] }
  0xe8   : > { %1443 = vmatpush3.bf16.msra.mxu0 %v1442_v10  ;;  %v1481_v50 = vpack.c.bf16 %v690_v49, %v689_v48  ;;  %v772_v52 = vld [vmem:[#allocation10 + $0x8] sm:$0xff]  ;;  %v773_v53 = vld [vmem:[#allocation10 + $0x10] sm:$0xff]  ;;  %v774_v55 = vld [vmem:[#allocation10 + $0x18] sm:$0xff]  ;;  %p1817_p10 = pneg %p1816_p4 }
  0xe9   : > { %1444 = vmatprep.subr.bf16.mxu0 %v1938_v0  ;;  %v1484_v54 = vpack.c.bf16 %v772_v52, %v771_v51  ;;  %v1487_v56 = vpack.c.bf16 %v774_v55, %v773_v53  ;;  %v775_v57 = vld [vmem:[#allocation10 + $0x20] sm:$0xff]  ;;  %v776_v58 = vld [vmem:[#allocation10 + $0x28] sm:$0xff]  ;;  %v777_v60 = vld [vmem:[#allocation10 + $0x30] sm:$0xff] }
  0xea   : > { %1464 = vmatpush3.bf16.msra.mxu1 %v1463_v33  ;;  %v1490_v59 = vpack.c.bf16 %v776_v58, %v775_v57  ;;  %v778_v61 = vld [vmem:[#allocation10 + $0x38] sm:$0xff]  ;;  %v779_v63 = vld [vmem:[#allocation10 + $0x40] sm:$0xff]  ;;  %v780_v2 = vld [vmem:[#allocation10 + $0x48] sm:$0xff] }
  0xeb   : > { %1465 = vmatprep.subr.bf16.mxu1 %v1938_v0  ;;  %v1493_v62 = vpack.c.bf16 %v778_v61, %v777_v60  ;;  %v1496_v3 = vpack.c.bf16 %v780_v2, %v779_v63  ;;  %v781_v4 = vld [vmem:[#allocation10 + $0x50] sm:$0xff]  ;;  %v782_v5 = vld [vmem:[#allocation10 + $0x58] sm:$0xff]  ;;  %v783_v7 = vld [vmem:[#allocation10 + $0x60] sm:$0xff] }
  0xec   : > { %1446 = vmatpush3.bf16.msra.mxu0 %v1445_v13  ;;  %v1499_v6 = vpack.c.bf16 %v782_v5, %v781_v4  ;;  %v784_v8 = vld [vmem:[#allocation10 + $0x68] sm:$0xff]  ;;  %v1217_v10 = vld [vmem:[%s2444_s3] ss:$0 sm:$0xff]  ;;  %v785_v43 = vld [vmem:[#allocation10 + $0x70] sm:$0xff] }
  0xed   : > { %1447 = vmatprep.subr.bf16.mxu0 %v1938_v0  ;;  %v1502_v9 = vpack.c.bf16 %v784_v8, %v783_v7  ;;  %v1218_v46 = vld [vmem:[%s2446_s5] ss:$0 sm:$0xff]  ;;  %v768_v48 = vld [vmem:[%s477_s30] sm:$0xff]  ;;  %v898_v58 = vld [vmem:[#allocation11 + $0x28] sm:$0xff]  ;;  %s1942_s30 = smov [#allocation13]  }
  0xee   : > { %1467 = vmatpush3.bf16.msra.mxu1 %v1466_v35  ;;  %v893_v52 = vld [vmem:[#allocation11] sm:$0xff]  ;;  %v896_v55 = vld [vmem:[#allocation11 + $0x18] sm:$0xff]  ;;  %v899_v60 = vld [vmem:[#allocation11 + $0x30] sm:$0xff]  ;;  %s1818_s17 = sshll.u32 %s1942_s30, 4  ;;  %s1819_s17 = int_to_ptr.vmem [resolvable:$false] %s1818_s17 }
  0xef   : > { %1468 = vmatprep.subr.bf16.mxu1 %v1938_v0  ;;  %v897_v57 = vld [vmem:[#allocation11 + $0x20] sm:$0xff]  ;;  %v900_v61 = vld [vmem:[#allocation11 + $0x38] sm:$0xff]  ;;  %v902_v2 = vld [vmem:[#allocation11 + $0x48] sm:$0xff]  ;;  %s1820_s9 = scalar_lea.vmem %s1819_s17, 256  ;;  %p1821_p5 = scmp.lt.s32.totalorder %s1009_s2, %s1819_s17 }
  0xf0   : > { %1449 = vmatpush3.bf16.msra.mxu0 %v1448_v16  ;;  %v901_v63 = vld [vmem:[#allocation11 + $0x40] sm:$0xff]  ;;  %v903_v4 = vld [vmem:[#allocation11 + $0x50] sm:$0xff]  ;;  %v904_v5 = vld [vmem:[#allocation11 + $0x58] sm:$0xff]  ;;  %p1822_p7 = scmp.lt.s32.totalorder %s1820_s9, %s1814_s10 }
  0xf1   : > { %1450 = vmatprep.subr.bf16.mxu0 %v1938_v0  ;;  %v905_v7 = vld [vmem:[#allocation11 + $0x60] sm:$0xff]  ;;  %v906_v8 = vld [vmem:[#allocation11 + $0x68] sm:$0xff] }
  0xf2   : > { %1470 = vmatpush3.bf16.msra.mxu1 %v1469_v38  ;;  %p1823_p8 = por %p1822_p7, %p1821_p5 }
  0xf3   : > { %1471 = vmatprep.subr.bf16.mxu1 %v1938_v0 }
  0xf4   : > { %1452 = vmatpush3.bf16.msra.mxu0 %v1451_v19  ;;  %p1824_p6 = pnand %p1823_p8, %p1817_p10 }
  0xf5   : > { %1453 = vmatprep.subr.bf16.mxu0 %v1938_v0 }
  0xf6   : > { %1473 = vmatpush3.bf16.msra.mxu1 %v1472_v41 }
  0xf7   : > { %1474 = vmatprep.subr.bf16.mxu1 %v1938_v0 }
  0xf8   : > { %1455 = vmatpush3.bf16.msra.mxu0 %v1454_v22 }
  0xf9   : > { %1456 = vmatprep.subr.bf16.mxu0 %v1938_v0 }
  0xfa   : > { %1476 = vmatpush3.bf16.msra.mxu1 %v1475_v44  ;;  %v786_v44 = vld [vmem:[#allocation10 + $0x78] sm:$0xff] }
  0xfb   : > { %1477 = vmatprep.subr.bf16.mxu1 %v1938_v0  ;;  %v1505_v45 = vpack.c.bf16 %v786_v44, %v785_v43 }
  0xfc   : > { %1458 = vmatpush3.bf16.msra.mxu0 %v1457_v25 }
  0xfd   : > { %1483 = vmatprep.subr.bf16.mxu0 %v1938_v0 }
  0xfe   : > { %1479 = vmatpush3.bf16.msra.mxu1 %v1478_v47 }
  0xff   : > { %1328 = vmatmul.mubr.f32.vlgmr.msra.gmra.mrb[0].mxu0 %v552_v26  ;;  %1480 = vmatprep.subr.bf16.mxu1 %v1938_v0 }
 0x100   : > { %1397 = vmatprep.mubr.msk.f32.mxu0 %vm1939_vm0, %v1940_v1  ;;  %1485 = vmatpush3.bf16.msra.mxu0 %v1484_v54  ;;  %v895_v54 = vld [vmem:[#allocation11 + $0x10] sm:$0xff] }
 0x101   : > { %1486 = vmatprep.subr.bf16.mxu0 %v1938_v0 }
 0x102   : > { %1482 = vmatpush3.bf16.msra.mxu1 %v1481_v50 }
 0x103   : > { %1507 = vmatprep.subr.bf16.mxu1 %v1938_v0 }
 0x104   : > { %1488 = vmatpush3.bf16.msra.mxu0 %v1487_v56  ;;  %v1511_v56 = vpack.c.bf16 %v896_v55, %v895_v54 }
 0x105   : > { %1489 = vmatprep.subr.bf16.mxu0 %v1938_v0 }
 0x108   : > { %1491 = vmatpush3.bf16.msra.mxu0 %v1490_v59  ;;  %v1514_v59 = vpack.c.bf16 %v898_v58, %v897_v57 }
 0x109   : > { %1492 = vmatprep.subr.bf16.mxu0 %v1938_v0 }
 0x10c   : > { %1494 = vmatpush3.bf16.msra.mxu0 %v1493_v62  ;;  %v1517_v62 = vpack.c.bf16 %v900_v61, %v899_v60 }
 0x10d   : > { %1495 = vmatprep.subr.bf16.mxu0 %v1938_v0 }
 0x110   : > { %1497 = vmatpush3.bf16.msra.mxu0 %v1496_v3  ;;  %v1520_v3 = vpack.c.bf16 %v902_v2, %v901_v63 }
 0x111   : > { %1498 = vmatprep.subr.bf16.mxu0 %v1938_v0 }
 0x114   : > { %1500 = vmatpush3.bf16.msra.mxu0 %v1499_v6  ;;  %v1523_v6 = vpack.c.bf16 %v904_v5, %v903_v4 }
 0x115   : > { %1501 = vmatprep.subr.bf16.mxu0 %v1938_v0 }
 0x118   : > { %1503 = vmatpush3.bf16.msra.mxu0 %v1502_v9  ;;  %v1526_v9 = vpack.c.bf16 %v906_v8, %v905_v7 }
 0x119   : > { %1504 = vmatprep.subr.bf16.mxu0 %v1938_v0 }
 0x11c   : > { %1506 = vmatpush3.bf16.msra.mxu0 %v1505_v45 }
 0x1d2   : > { %v642_v11 = vpop.f32.mrb[0].mxu0 }
 0x1d3   : > { %v643_v12 = vadd.f32 %v1217_v10, %v642_v11  ;;  %v1329_v13 = vpop.f32.mrb[1].mxu0  ;;  %v907_v10 = vld [vmem:[#allocation11 + $0x70] sm:$0xff]  ;;  %v908_v11 = vld [vmem:[#allocation11 + $0x78] sm:$0xff] }
 0x1d4   : > { %v1219_v13 = vld [vmem:[%s2449_s8] ss:$0 sm:$0xff] }
 0x1d5   : > { %v647_v14 = vmul.f32 0.70710677, %v643_v12  ;;  %v646_v40 = vmul.f32 0.5, %v643_v12  ;;  %v1529_v12 = vpack.c.bf16 %v908_v11, %v907_v10 }
 0x1d7   : > { %v650_v15 = vand.u32 2147483647, %v647_v14  ;;  %vm648_vm1 = vcmp.lt.f32.partialorder %v647_v14, 0.0 }
 0x1d8   : > { %v649_v38 = vsel %vm648_vm1, -1.0, %v1941_v37 }
 0x1d9   : > { %v651_v16 = vmul.f32 0.3275911, %v650_v15  ;;  %v666_v20 = vsub.f32 0.0, %v650_v15 }
 0x1db   : > { %v652_v17 = vadd.f32 1.0, %v651_v16  ;;  %v667_v23 = vmul.f32 %v666_v20, %v650_v15 }
 0x1dd   : > { %1634 = vrcp.f32 %v652_v17  ;;  %v668_v26 = vmul.f32 1.442695, %v667_v23 }
 0x1df   : > { %1636 = vpow2.f32 %v668_v26 }
 0x1e7   : > { %v1635_v18 = vpop.eup %1634 }
 0x1e8   : > { %v654_v19 = vmul.f32 %v1635_v18, %v652_v17 }
 0x1e9   : > { %v1637_v34 = vpop.eup %1636 }
 0x1ea   : > { %v655_v21 = vsub.f32 2.0, %v654_v19 }
 0x1ec   : > { %v656_v22 = vmul.f32 %v1635_v18, %v655_v21 }
 0x1ee   : > { %v657_v24 = vmul.f32 1.0614054, %v656_v22 }
 0x1f0   : > { %v658_v25 = vadd.f32 -1.4531521, %v657_v24 }
 0x1f2   : > { %v659_v27 = vmul.f32 %v658_v25, %v656_v22 }
 0x1f4   : > { %v660_v28 = vadd.f32 1.4214138, %v659_v27 }
 0x1f6   : > { %v661_v29 = vmul.f32 %v660_v28, %v656_v22 }
 0x1f8   : > { %v662_v30 = vadd.f32 -0.28449672, %v661_v29 }
 0x1fa   : > { %v663_v31 = vmul.f32 %v662_v30, %v656_v22 }
 0x1fc   : > { %v664_v32 = vadd.f32 0.2548296, %v663_v31 }
 0x1fe   : > { %v665_v33 = vmul.f32 %v664_v32, %v656_v22 }
 0x200   : > { %v670_v35 = vmul.f32 %v1637_v34, %v665_v33 }
 0x202   : > { %v671_v36 = vsub.f32 1.0, %v670_v35 }
 0x204   : > { %v672_v39 = vmul.f32 %v671_v36, %v649_v38 }
 0x206   : > { %v673_v41 = vadd.f32 1.0, %v672_v39 }
 0x208   : > { %v674_v42 = vmul.f32 %v673_v41, %v646_v40 }
 0x20a   : > { %1363 = vmatmul.mubr.f32.vlgmr.msra.gmra.mrb[0].mxu1 %v674_v42 }
 0x20b   : > { %1432 = vmatprep.mubr.msk.f32.mxu1 %vm1939_vm0, %v1940_v1  ;;  %v894_v1 = vld [vmem:[#allocation11 + $0x8] sm:$0xff] }
 0x20c   : > { %v1508_v53 = vpack.c.bf16 %v894_v1, %v893_v52 }
 0x20e   : > { %1509 = vmatpush3.bf16.msra.mxu1 %v1508_v53 }
 0x20f   : > { %1510 = vmatprep.subr.bf16.mxu1 %v1938_v0 }
 0x212   : > { %1512 = vmatpush3.bf16.msra.mxu1 %v1511_v56 }
 0x213   : > { %1513 = vmatprep.subr.bf16.mxu1 %v1938_v0 }
 0x216   : > { %1515 = vmatpush3.bf16.msra.mxu1 %v1514_v59 }
 0x217   : > { %1516 = vmatprep.subr.bf16.mxu1 %v1938_v0 }
 0x21a   : > { %1518 = vmatpush3.bf16.msra.mxu1 %v1517_v62 }
 0x21b   : > { %1519 = vmatprep.subr.bf16.mxu1 %v1938_v0 }
 0x21e   : > { %1521 = vmatpush3.bf16.msra.mxu1 %v1520_v3 }
 0x21f   : > { %1522 = vmatprep.subr.bf16.mxu1 %v1938_v0 }
 0x222   : > { %1524 = vmatpush3.bf16.msra.mxu1 %v1523_v6 }
 0x223   : > { %1525 = vmatprep.subr.bf16.mxu1 %v1938_v0 }
 0x226   : > { %1527 = vmatpush3.bf16.msra.mxu1 %v1526_v9 }
 0x227   : > { %1528 = vmatprep.subr.bf16.mxu1 %v1938_v0 }
 0x22a   : > { %1530 = vmatpush3.bf16.msra.mxu1 %v1529_v12 }
 0x2dd   : > { %v764_v47 = vpop.f32.mrb[0].mxu1 }
 0x2de   : > { %v765_v49 = vadd.f32 %v1218_v46, %v764_v47  ;;  %v1364_v50 = vpop.f32.mrb[1].mxu1 }
 0x2e0   : > { %v769_v51 = vadd.f32 %v768_v48, %v765_v49 }
 0x2e2   : > { %1398 = vmatmul.mubr.f32.vlgmr.msra.gmra.mrb[2].mxu0 %v769_v51  ;;  %770 = vst [vmem:[%s540_s16] sm:$0xff] %v769_v51 }
 0x3b5   : > { %v860_v14 = vpop.f32.mrb[2].mxu0 }
 0x3b6   : > { %v861_v15 = vadd.f32 %v1219_v13, %v860_v14  ;;  %v1399_v16 = vpop.f32.mrb[3].mxu0 }
 0x3b8   : > { %v865_v17 = vmul.f32 0.70710677, %v861_v15  ;;  %v864_v42 = vmul.f32 0.5, %v861_v15 }
 0x3ba   : > { %v868_v18 = vand.u32 2147483647, %v865_v17  ;;  %vm866_vm2 = vcmp.lt.f32.partialorder %v865_v17, 0.0 }
 0x3bb   : > { %v867_v40 = vsel %vm866_vm2, -1.0, %v1941_v37 }
 0x3bc   : > { %v869_v19 = vmul.f32 0.3275911, %v868_v18  ;;  %v884_v23 = vsub.f32 0.0, %v868_v18 }
 0x3be   : > { %v870_v20 = vadd.f32 1.0, %v869_v19  ;;  %v885_v25 = vmul.f32 %v884_v23, %v868_v18 }
 0x3c0   : > { %1638 = vrcp.f32 %v870_v20  ;;  %v886_v28 = vmul.f32 1.442695, %v885_v25 }
 0x3c2   : > { %1640 = vpow2.f32 %v886_v28 }
 0x3ca   : > { %v1639_v21 = vpop.eup %1638 }
 0x3cb   : > { %v872_v22 = vmul.f32 %v1639_v21, %v870_v20 }
 0x3cc   : > { %v1641_v36 = vpop.eup %1640 }
 0x3cd   : > { %v873_v0 = vsub.f32 2.0, %v872_v22 }
 0x3cf   : > { %v874_v24 = vmul.f32 %v1639_v21, %v873_v0 }
 0x3d1   : > { %v875_v26 = vmul.f32 1.0614054, %v874_v24 }
 0x3d3   : > { %v876_v27 = vadd.f32 -1.4531521, %v875_v26 }
 0x3d5   : > { %v877_v29 = vmul.f32 %v876_v27, %v874_v24 }
 0x3d7   : > { %v878_v30 = vadd.f32 1.4214138, %v877_v29 }
 0x3d9   : > { %v879_v31 = vmul.f32 %v878_v30, %v874_v24 }
 0x3db   : > { %v880_v32 = vadd.f32 -0.28449672, %v879_v31 }
 0x3dd   : > { %v881_v33 = vmul.f32 %v880_v32, %v874_v24 }
 0x3df   : > { %v882_v34 = vadd.f32 0.2548296, %v881_v33 }
 0x3e1   : > { %v883_v35 = vmul.f32 %v882_v34, %v874_v24 }
 0x3e3   : > { %v888_v38 = vmul.f32 %v1641_v36, %v883_v35 }
 0x3e5   : > { %v889_v39 = vsub.f32 1.0, %v888_v38 }
 0x3e7   : > { %v890_v41 = vmul.f32 %v889_v39, %v867_v40 }
 0x3e9   : > { %v891_v43 = vadd.f32 1.0, %v890_v41 }
 0x3eb   : > { %v892_v44 = vmul.f32 %v891_v43, %v864_v42 }
 0x3ed   : > { %1433 = vmatmul.mubr.f32.vlgmr.msra.gmra.mrb[2].mxu1 %v892_v44 }
 0x3ee   : > { %1827 = shalt.err (!%p1824_p6)
}
 0x3ef   : > { %s1828_s20 = scalar_lea.hbm %s2361_s6, 128  ;;  %s1832_s12 = scalar_lea.hbm %s2490_s13, 256 }
 0x3f0   : > { %p1829_p11 = scmp.ne.s32.totalorder %s2361_s6, %s1828_s20  ;;  %p1833_p12 = scmp.lt.u32.totalorder %s2361_s6, %s2490_s13 }
 0x3f1   : > { %p1834_p3 = scmp.lt.u32.totalorder %s1832_s12, %s1828_s20  ;;  %p1836_p0 = scmp.lt.u32.totalorder %s1828_s20, %s2361_s6 }
 0x3f2   : > { %p1830_p1 = pnand %p1829_p11, %p2491_p2 }
 0x3f3   : > { %p1835_p13 = por %p1834_p3, %p1833_p12 }
 0x3f4   : > { %p1831_p9 = pneg %p1830_p1 }
 0x3f5   : > { %p1837_p4 = por %p1836_p0, %p1835_p13 }
 0x3f7   : > { %p1838_p10 = pnand %p1837_p4, %p1831_p9 }
 0x3f9   : > { %1841 = shalt.err (!%p1838_p10)
}
 0x3fa   : > { %1551 = dma.vmem_to_hbm [thread:$0]  (%p2491_p2), %s1009_s2, 128, %s2361_s6, %s990_s28  }
 0x3fb   : > { %p548_p5 = scmp.lt.s32.totalorder %s2030_s27, 1  ;;  %s2492_s9 = sld [smem:[#allocation26_spill]] }
 0x3fc   : > { %s2493_s12 = sld [smem:[#allocation29_spill]]  ;;  %s547_s19 = scalar_lea.vmem [#allocation14], %s2271_s7 }
 0x3fd   : > { %s549_s26 = scalar_select %p548_p5, %s2030_s27, 1 }
 0x3fe   : > { %s1021_s14 = sshll.u32 %s547_s19, 4  ;;  %s2494_s28 = sld [smem:[#allocation31_spill]]  ;;  %s2399_s14 = int_to_ptr.vmem [resolvable:$true] %s1021_s14 }
 0x3ff   : > { %s1216_s10 = sshll.u32 %s549_s26, 3  ;;  %s1842_s30 = scalar_lea.vmem %s2399_s14, 128 }
 0x400   : > { %p1843_p7 = scmp.ne.s32.totalorder %s2399_s14, %s1842_s30  ;;  %s1943_s7 = smov [#allocation14]  }
 0x401   : > { %s551_s20 = scalar_lea.vmem %s2492_s9, %s1216_s10  ;;  %s995_s10 = scalar_lea.sflag [#allocation15], %s2268_s15 }
 0x402   : > { %v1220_v37 = vld [vmem:[%s2493_s12] ss:$0 sm:$0xff]  ;;  %p1844_p8 = pnand %p1843_p7, %p2491_p2  ;;  %s1846_s17 = sshll.u32 %s1943_s7, 4  ;;  %s1847_s17 = int_to_ptr.vmem [resolvable:$false] %s1846_s17 }
 0x403   : > { %v986_v46 = vld [vmem:[%s551_s20] sm:$0xff]  ;;  %s1848_s27 = scalar_lea.vmem %s1847_s17, 256  ;;  %p1849_p11 = scmp.lt.s32.totalorder %s2399_s14, %s1847_s17 }
 0x404   : > { %s2397_s26 = scalar_lea.hbm %s2494_s28, %s1223_s4  ;;  %p1845_p6 = pneg %p1844_p8 }
 0x405   : > { %p1850_p1 = scmp.lt.s32.totalorder %s1848_s27, %s1842_s30 }
 0x407   : > { %p1851_p9 = por %p1850_p1, %p1849_p11 }
 0x409   : > { %p1852_p12 = pnand %p1851_p9, %p1845_p6 }
 0x4c0   : > { %v982_v45 = vpop.f32.mrb[2].mxu1 }
 0x4c1   : > { %v983_v47 = vadd.f32 %v1220_v37, %v982_v45  ;;  %v1434_v48 = vpop.f32.mrb[3].mxu1 }
 0x4c3   : > { %v987_v49 = vadd.f32 %v986_v46, %v983_v47 }
 0x4c5   : > { %988 = vst [vmem:[%s547_s19] sm:$0xff] %v987_v49 }
 0x4c6   : > { %1855 = shalt.err (!%p1852_p12)
}
 0x4c7   : > { %s1856_s15 = scalar_lea.hbm %s2397_s26, 128  ;;  %s1860_s20 = scalar_lea.hbm %s2494_s28, 256 }
 0x4c8   : > { %p1857_p3 = scmp.ne.s32.totalorder %s2397_s26, %s1856_s15  ;;  %p1861_p4 = scmp.lt.u32.totalorder %s2397_s26, %s2494_s28 }
 0x4c9   : > { %p1862_p10 = scmp.lt.u32.totalorder %s1860_s20, %s1856_s15  ;;  %p1864_p7 = scmp.lt.u32.totalorder %s1856_s15, %s2397_s26 }
 0x4ca   : > { %p1858_p13 = pnand %p1857_p3, %p2491_p2 }
 0x4cb   : > { %p1863_p5 = por %p1862_p10, %p1861_p4 }
 0x4cc   : > { %p1859_p0 = pneg %p1858_p13 }
 0x4cd   : > { %p1865_p8 = por %p1864_p7, %p1863_p5 }
 0x4cf   : > { %p1866_p6 = pnand %p1865_p8, %p1859_p0 }
 0x4d1   : > { %1869 = shalt.err (!%p1866_p6)
}
 0x4d2   : > { %1552 = dma.vmem_to_hbm [thread:$0]  (%p2491_p2), %s2399_s14, 128, %s2397_s26, %s995_s10  }
 0x4d3 PF: > { %s1033_s12 = sand.u32 1, %s1916_s21   ;;  %p2495_p11 = scmp.ne.s32.totalorder %s2480_s29, 0 }
 0x4d4   : > { %p2496_p1 = scmp.ge.s32.totalorder %s1928_s24, 2  ;;  %s1034_s19 = scalar_lea.sflag [#allocation4], %s1033_s12 }
 0x4d6   : > { %p1576_p9 = pnand %p2496_p1, %p2495_p11 }
 0x4d8   : > { %1907 = dma.done.wait (!%p1576_p9), %s1034_s19, 128  }
 0x4d9   : > { %1909 = vsyncadd (!%p1576_p9), %s1034_s19, 4294967168  ;;  %s1043_s6 = scalar_lea.sflag [#allocation15], %s1033_s12 }
 0x4da   : > { %1911 = dma.done.wait (!%p1576_p9), %s1043_s6, 128  }
 0x4db   : > { %1913 = vsyncadd (!%p1576_p9), %s1043_s6, 4294967168  ;;  %s2497_s11 = sld [smem:[#allocation23_spill]]  ;;  %p34_p2 = scmp.ge.s32.totalorder %s2161_s25, 4  }
 0x4dc   : > { %s2498_s21 = smov %s1920_s22  ;;  %s2499_s22 = smov %s1924_s23 }
 0x4dd   : > { %s2501_s24 = smov %s2161_s25  ;;  %36 = sbr.rel (!%p34_p2) target bundleno = 20 (0x14), region = 158 }
 0x4e1   : > { %s2500_s23 = smov %s2497_s11 }
 0x4e4   :  { %1048 = vsyncpa [#allocation3], 1 }
 0x4e5   :  { %1050 = vsyncpa [#allocation3 + $0x1], 1 }
 0x4e6   :  { %1051 = vsyncpa [#allocation6], 1 }
 0x4e7   :  { %1053 = vsyncpa [#allocation6 + $0x1], 1 }
 0x4e8   :  { %1054 = vsyncpa [#allocation9], 1 }
 0x4e9   :  { %1055 = vsyncpa [#allocation12], 1 }
 0x4ea   :  { %1056 = vsyncpa [#allocation4], 1 }
 0x4eb   :  { %1058 = vsyncpa [#allocation4 + $0x1], 1 }
 0x4ec   :  { %1059 = vsyncpa [#allocation15], 1 }
 0x4ed   :  { %1061 = vsyncpa [#allocation15 + $0x1], 1 }

</bundles_post_ra>
